<compile_context>
chip_gen: v7x
topology: tpu7x:2x2x1
jax: 0.10.0
libtpu: 0.0.40
codegen_flags: <defaults>
</compile_context>

<pallas_src>
import jax
import jax.numpy as jnp
from jax import lax
from jax.experimental import pallas as pl
from jax.experimental.pallas import tpu as pltpu

_LANES = 128
_BLOCK_BYTES = 4 * 1024 * 1024        # ~4 MiB of the NATIVE dtype per streamed block
_VMEM_LIMIT_BYTES = 40 * 1024 * 1024  # headroom for double-buffered blocks + f32 temps


def _ceil_div(a: int, b: int) -> int:
    return -(-a // b)


def _num_tensorcores() -> int:
    """Best-effort TensorCores-per-chip (2 on v7x, 1 on v5e/v6e); safe default 1."""
    try:
        info = pltpu.get_tpu_info()
        for attr in ("num_cores", "core_count", "num_tensorcores",
                     "tensorcore_count", "cores_per_chip"):
            v = getattr(info, attr, None)
            if isinstance(v, int) and 1 <= v <= 16:
                return v
    except Exception:
        pass
    try:
        kind = jax.devices()[0].device_kind.lower()
        if "v7" in kind:
            return 2
    except Exception:
        pass
    return 1


def _make_neg_mean_kernel(*, block_rows, acc_rows, rows_total, tiles_per_slice,
                          full_tiles, inv_n, needs_mask):
    """Kernel with all shape/config constants baked in at trace time."""

    def kernel(x_ref, o_ref, acc_ref):
        t = pl.program_id(1)

        @pl.when(t == 0)
        def _init():
            acc_ref[...] = jnp.zeros_like(acc_ref)

        # Native-dtype block streamed from HBM; cast to f32 in-kernel.
        x = x_ref[...].astype(jnp.float32)

        def accumulate(v):
            # Per-lane partial sums: pure VALU vreg adds into a vreg-shaped
            # accumulator; no per-step XLU reduce or scalar path.
            acc_ref[...] += v.reshape(-1, acc_rows, _LANES).sum(axis=0)

        if needs_mask:
            tile_idx = pl.program_id(0) * tiles_per_slice + t   # UNclamped

            # Fast path: fully in-range interior tiles pay no mask at all.
            @pl.when(tile_idx < full_tiles)
            def _interior():
                accumulate(x)

            # Boundary / overhang tiles: scalar-threshold row mask.  A fully
            # out-of-range (clamped, re-read) tile gets limit <= 0 -> all zero.
            @pl.when(tile_idx >= full_tiles)
            def _boundary():
                limit = rows_total - tile_idx * block_rows
                row_iota = lax.broadcasted_iota(jnp.int32, (block_rows, _LANES), 0)
                accumulate(jnp.where(row_iota < limit, x, 0.0))
        else:
            accumulate(x)

        @pl.when(t == tiles_per_slice - 1)
        def _finalize():
            # Single cross-lane/sublane reduce + negate + 1/n scale per slice.
            loss = -jnp.sum(acc_ref[...]) * inv_n
            o_ref[...] = jnp.reshape(loss, (1, 1, 1))

    return kernel


def hinge_loss_g(d_g_z: jax.Array) -> jax.Array:
    """Pallas equivalent of HingeLossG.forward: (-d_g_z).mean()."""
    n = d_g_z.size
    out_dtype = d_g_z.dtype
    if n == 0:
        # PyTorch .mean() of an empty tensor is NaN.
        return jnp.array(jnp.nan, dtype=out_dtype)

    flat = d_g_z.reshape(-1)                 # free (bitcast) for contiguous input
    rows_total = n // _LANES
    rem = n - rows_total * _LANES
    inv_n = 1.0 / float(n)

    # Ragged <128-element tail handled in the wrapper (no full-tensor pad copy).
    tail = jnp.float32(0.0)
    if rem:
        tail = -jnp.sum(flat[rows_total * _LANES:].astype(jnp.float32)) * inv_n

    if rows_total == 0:
        # Degenerate n < 128 input: wrapper-only path.
        return tail.astype(out_dtype)

    prefix = flat if rem == 0 else flat[: rows_total * _LANES]
    x2d = prefix.reshape(rows_total, _LANES)  # native dtype; cast happens in-kernel

    itemsize = jnp.dtype(d_g_z.dtype).itemsize
    # dtype-aware block sizing: fixed byte budget per DMA, rounded to 8 sublanes.
    budget_rows = max(8, (_BLOCK_BYTES // (itemsize * _LANES)) // 8 * 8)
    block_rows = rows_total if rows_total <= budget_rows else budget_rows

    tiles_total = _ceil_div(rows_total, block_rows)
    num_slices = _num_tensorcores() if tiles_total >= 2 else 1
    num_slices = min(num_slices, tiles_total)
    tiles_per_slice = _ceil_div(tiles_total, num_slices)
    acc_rows = 8 if block_rows % 8 == 0 else block_rows
    needs_mask = (num_slices * tiles_per_slice * block_rows) != rows_total
    full_tiles = rows_total // block_rows     # tiles strictly below this are full

    kernel = _make_neg_mean_kernel(
        block_rows=block_rows, acc_rows=acc_rows, rows_total=rows_total,
        tiles_per_slice=tiles_per_slice, full_tiles=full_tiles,
        inv_n=inv_n, needs_mask=needs_mask)

    def x_index(s, t):
        # Clamp so a fully out-of-range overhang tile (uneven slice split)
        # re-reads the last in-range block; its contribution is zeroed in-kernel.
        return (jnp.minimum(s * tiles_per_slice + t, tiles_total - 1), 0)

    partials = pl.pallas_call(
        kernel,
        out_shape=jax.ShapeDtypeStruct((num_slices, 1, 1), jnp.float32),
        grid_spec=pltpu.PrefetchScalarGridSpec(
            num_scalar_prefetch=0,
            grid=(num_slices, tiles_per_slice),
            in_specs=[pl.BlockSpec((block_rows, _LANES), x_index)],
            out_specs=pl.BlockSpec((1, 1, 1), lambda s, t: (s, 0, 0)),
            scratch_shapes=[pltpu.VMEM((acc_rows, _LANES), jnp.float32)],
        ),
        compiler_params=pltpu.CompilerParams(
            dimension_semantics=("parallel", "arbitrary"),
            vmem_limit_bytes=_VMEM_LIMIT_BYTES,
        ),
        cost_estimate=pl.CostEstimate(
            flops=n,
            transcendentals=0,
            bytes_accessed=n * itemsize + 4 * num_slices,
        ),
    )(x2d)

    # Each slice already contributed -partial_sum / n; add partials + ragged tail.
    return (jnp.sum(partials) + tail).astype(out_dtype)


if __name__ == "__main__":
    key = jax.random.PRNGKey(0)

    # D_G_z: per-patch discriminator scores for generated images, NCHW layout.
    d_g_z = jax.random.normal(key, (2, 1, 16, 16), dtype=jnp.float32)
    data_dict = {}                       # unused by HingeLossG.forward
    output_dict = {"D_G_z": d_g_z}

    loss = jax.block_until_ready(hinge_loss_g(output_dict["D_G_z"]))
    ref = jnp.mean(-d_g_z)
    assert jnp.allclose(loss, ref, atol=1e-6, rtol=1e-6), (loss, ref)

    # Multi-tile input exercising the gated boundary-mask path (8704 rows ->
    # one full 8192-row block + one masked boundary block).
    big = jax.random.normal(jax.random.PRNGKey(1), (1, 8704, 128), dtype=jnp.float32)
    loss_big = jax.block_until_ready(hinge_loss_g(big))
    ref_big = jnp.mean(-big)
    assert jnp.allclose(loss_big, ref_big, atol=1e-5, rtol=1e-5), (loss_big, ref_big)

    # bf16 input: exercises the dtype-aware block sizing + in-kernel f32 cast.
    xb = jax.random.normal(jax.random.PRNGKey(2), (2, 3, 40, 40), dtype=jnp.bfloat16)
    loss_b = jax.block_until_ready(hinge_loss_g(xb))
    ref_b = jnp.mean(-(xb.astype(jnp.float32)))
    assert jnp.allclose(loss_b.astype(jnp.float32), ref_b, atol=1e-2), (loss_b, ref_b)

    # Ragged numel % 128 != 0: kernel on the aligned prefix + wrapper tail sum.
    xr = jax.random.normal(jax.random.PRNGKey(3), (10, 13), dtype=jnp.float32)
    loss_r = jax.block_until_ready(hinge_loss_g(xr))
    ref_r = jnp.mean(-xr)
    assert jnp.allclose(loss_r, ref_r, atol=1e-6, rtol=1e-6), (loss_r, ref_r)

    print("KERNEL_OK")
</pallas_src>

<mosaic_0001>
module attributes {stable_mosaic.version = 11 : i64} {
  func.func @kernel(%arg0: i32, %arg1: i32, %arg2: memref<4x128xf32, #tpu.memory_space<vmem>>, %arg3: memref<1x1x1xf32, #tpu.memory_space<vmem>>, %arg4: memref<4x128xf32, #tpu.memory_space<vmem>>) attributes {dimension_semantics = [#tpu.dimension_semantics<parallel>, #tpu.dimension_semantics<arbitrary>], iteration_bounds = array<i64: 1, 1>, scalar_prefetch = 0 : i64, scratch_operands = 1 : i64, tpu.core_type = #tpu.core_type<tc>, window_params = [{transform_indices = @transform_0, window_bounds = array<i64: 4, 128>}, {transform_indices = @transform_1, window_bounds = array<i64: 1, 1, 1>}]} {
    %c0_i32 = arith.constant 0 : i32
    %0 = arith.cmpi eq, %arg1, %c0_i32 : i32
    %1 = arith.extui %0 : i1 to i32
    %c0_i32_0 = arith.constant 0 : i32
    %2 = arith.cmpi ne, %1, %c0_i32_0 : i32
    scf.if %2 {
      %cst_8 = arith.constant 0.000000e+00 : f32
      %12 = vector.broadcast %cst_8 : f32 to vector<4x128xf32>
      %c0_9 = arith.constant 0 : index
      %c0_10 = arith.constant 0 : index
      %13 = vector.load %arg4[%c0_9, %c0_10] : memref<4x128xf32, #tpu.memory_space<vmem>>, vector<4x128xf32>
      tpu.vector_store %arg4[%c0_9, %c0_10], %12 {strides = array<i32>} : memref<4x128xf32, #tpu.memory_space<vmem>>, vector<4x128xf32>,
    } else {
    }
    %c0 = arith.constant 0 : index
    %c0_1 = arith.constant 0 : index
    %3 = vector.load %arg2[%c0, %c0_1] : memref<4x128xf32, #tpu.memory_space<vmem>>, vector<4x128xf32>
    %c0_2 = arith.constant 0 : index
    %c0_3 = arith.constant 0 : index
    %4 = vector.load %arg4[%c0_2, %c0_3] : memref<4x128xf32, #tpu.memory_space<vmem>>, vector<4x128xf32>
    %5 = vector.shape_cast %3 : vector<4x128xf32> to vector<1x4x128xf32>
    %cst = arith.constant dense<0.000000e+00> : vector<4x128xf32>
    %6 = vector.multi_reduction <add>, %5, %cst [0] : vector<1x4x128xf32> to vector<4x128xf32>
    %7 = arith.addf %4, %6 : vector<4x128xf32>
    %c0_4 = arith.constant 0 : index
    %c0_5 = arith.constant 0 : index
    %8 = vector.load %arg4[%c0_4, %c0_5] : memref<4x128xf32, #tpu.memory_space<vmem>>, vector<4x128xf32>
    tpu.vector_store %arg4[%c0_4, %c0_5], %7 {strides = array<i32>} : memref<4x128xf32, #tpu.memory_space<vmem>>, vector<4x128xf32>,
    %c0_i32_6 = arith.constant 0 : i32
    %9 = arith.cmpi eq, %arg1, %c0_i32_6 : i32
    %10 = arith.extui %9 : i1 to i32
    %c0_i32_7 = arith.constant 0 : i32
    %11 = arith.cmpi ne, %10, %c0_i32_7 : i32
    scf.if %11 {
      %c0_8 = arith.constant 0 : index
      %c0_9 = arith.constant 0 : index
      %12 = vector.load %arg4[%c0_8, %c0_9] : memref<4x128xf32, #tpu.memory_space<vmem>>, vector<4x128xf32>
      %13 = vector.shape_cast %12 : vector<4x128xf32> to vector<1x4x128xf32>
      %cst_10 = arith.constant dense<0.000000e+00> : vector<1xf32>
      %14 = vector.multi_reduction <add>, %13, %cst_10 [1, 2] : vector<1x4x128xf32> to vector<1xf32>
      %15 = vector.shape_cast %14 : vector<1xf32> to vector<1x1x1xf32>
      %16 = vector.extract %15[0, 0, 0] : f32 from vector<1x1x1xf32>
      %cst_11 = arith.constant 0.000000e+00 : f32
      %17 = arith.subf %cst_11, %16 : f32
      %cst_12 = arith.constant 0.001953125 : f32
      %18 = arith.mulf %17, %cst_12 : f32
      %19 = vector.broadcast %18 : f32 to vector<1x1x1xf32>
      %c0_13 = arith.constant 0 : index
      %c0_14 = arith.constant 0 : index
      %c0_15 = arith.constant 0 : index
      %20 = vector.load %arg3[%c0_13, %c0_14, %c0_15] : memref<1x1x1xf32, #tpu.memory_space<vmem>>, vector<1x1x1xf32>
      tpu.vector_store %arg3[%c0_13, %c0_14, %c0_15], %19 {strides = array<i32>} : memref<1x1x1xf32, #tpu.memory_space<vmem>>, vector<1x1x1xf32>,
    } else {
    }
    return
  }
  func.func @transform_0(%arg0: i32, %arg1: i32) -> (i32, i32) {
    %c1_i32 = arith.constant 1 : i32
    %0 = arith.muli %arg0, %c1_i32 : i32
    %1 = arith.addi %0, %arg1 : i32
    %c0_i32 = arith.constant 0 : i32
    %2 = arith.minsi %1, %c0_i32 : i32
    %c0_i32_0 = arith.constant 0 : i32
    %c0_i32_1 = arith.constant 0 : i32
    return %2, %c0_i32_0 : i32, i32
  }
  func.func @transform_1(%arg0: i32, %arg1: i32) -> (i32, i32, i32) {
    %c0_i32 = arith.constant 0 : i32
    %c0_i32_0 = arith.constant 0 : i32
    %c0_i32_1 = arith.constant 0 : i32
    return %arg0, %c0_i32, %c0_i32_0 : i32, i32, i32
  }
}

</mosaic_0001>

<bundles_post_ra>
// kernel: tpu_custom_call.1
= control target key start
LH: loop header
LB: loop body
LE: loop exit
PB: predicated region body
PF: predicated region fallthrough
CT: control target
= control target key end

     0   :  { %6 = vsyncpa [#allocation4], 0  ;;  %s166_s0 = inlined_call_operand.hbm [shape: f32[4,128], index: 0, kind: input, shape index: {}]   ;;  %s167_s1 = inlined_call_operand.hbm [shape: f32[1,1,1], index: 1, kind: output, shape index: {}]  }
   0x1   :  { %7 = vsyncpa [#allocation5], 0  ;;  %s129_s6 = smov [#allocation3]   ;;  %s81_s10 = scalar_lea.hbm %s166_s0, 64 }
   0x2   :  { %s19_s7 = sshll.u32 %s129_s6, 4  ;;  %p82_p0 = scmp.ne.s32.totalorder %s166_s0, %s81_s10  ;;  %s20_s7 = int_to_ptr.vmem [resolvable:$true] %s19_s7 }
   0x3   :  { %p85_p1 = scmp.lt.u32.totalorder %s81_s10, %s166_s0 }
   0x5   :  { %p87_p2 = pnand %p85_p1, %p82_p0 }
   0x7   :  { %90 = shalt.err (!%p87_p2)
}
   0x8   :  { %s91_s15 = scalar_lea.vmem %s20_s7, 64  ;;  %p96_p4 = scmp.lt.s32.totalorder %s20_s7, %s20_s7 }
   0x9   :  { %p92_p3 = scmp.ne.s32.totalorder %s20_s7, %s91_s15  ;;  %p97_p5 = scmp.lt.s32.totalorder %s91_s15, %s91_s15 }
   0xb   :  { %p98_p6 = por %p97_p5, %p96_p4 }
   0xd   :  { %p99_p7 = pnand %p98_p6, %p92_p3 }
   0xf   :  { %102 = shalt.err (!%p99_p7)
}
  0x10   :  { %22 = dma.hbm_to_vmem [thread:$0]  %s166_s0, 64, %s20_s7, [#allocation4]  }
  0x11   :  { %125 = dma.done.wait [#allocation4], 64  }
  0x12   :  { %126 = vsyncadd [#allocation4], 4294967232  ;;  %v130_v0 = vmov 0.0   ;;  %v34_v1 = vld [vmem:[#allocation3] sm:$0xf]  ;;  %vm43_vm0 = vcmask 1043456  }
  0x13   :  { %33 = vst [vmem:[#allocation2] sm:$0xf] %v130_v0  ;;  %s131_s19 = smov [#allocation6]   ;;  %vm57_vm1 = vcmask 0  }
  0x14   :  { %s65_s20 = sshll.u32 %s131_s19, 4  ;;  %s66_s20 = int_to_ptr.vmem [resolvable:$true] %s65_s20 }
  0x15   :  { %s103_s22 = scalar_lea.vmem %s66_s20, 16  ;;  %s107_s23 = scalar_lea.vmem %s66_s20, 32 }
  0x16   :  { %p104_p8 = scmp.ne.s32.totalorder %s66_s20, %s103_s22  ;;  %p108_p9 = scmp.lt.s32.totalorder %s66_s20, %s66_s20 }
  0x17   :  { %p109_p10 = scmp.lt.s32.totalorder %s107_s23, %s103_s22 }
  0x19   :  { %p110_p11 = por %p109_p10, %p108_p9 }
  0x1a   :  { %v35_v2 = vld [vmem:[#allocation2] sm:$0xf] }
  0x1b   :  { %v37_v3 = vadd.f32 %v35_v2, %v34_v1  ;;  %p111_p12 = pnand %p110_p11, %p104_p8 }
  0x1d   :  { %38 = vst [vmem:[#allocation2] sm:$0xf] %v37_v3 }
  0x24   :  { %v42_v4 = vld [vmem:[#allocation2] sm:$0xf] }
  0x25   :  { %v44_v5 = vsel %vm43_vm0, %v42_v4, 0.0 }
  0x26   :  { %45 = vadd.xlane.f32.xlu0 %v44_v5 }
  0xb3   :  { %v46_v6 = vpop.xlane.xlu0 %45 }
  0xb4   :  { %v47_v7 = vrot.slane %v46_v6, 4 }
  0xb6   :  { %v48_v8 = vadd.f32 %v47_v7, %v46_v6 }
  0xb8   :  { %v49_v9 = vrot.slane %v48_v8, 2 }
  0xba   :  { %v50_v10 = vadd.f32 %v49_v9, %v48_v8 }
  0xbc   :  { %v51_v11 = vrot.slane %v50_v10, 1 }
  0xbe   :  { %v52_v12 = vadd.f32 %v51_v11, %v50_v10 }
  0xc0   :  { %76 = vpush %v52_v12 }
  0xf1   :  { %s77_s0 = spop %76 }
  0xf2   :  { %s54_s18 = ssub.f32 0.0, %s77_s0 }
  0xf4   :  { %s55_s21 = smul.f32 0.001953125, %s54_s18 }
  0xf6   :  { %v56_v13 = vstv %s55_s21 }
  0xf7   :  { %58 = vst.msk [vmem:[#allocation6] sm:$0x1] %vm57_vm1, %v56_v13 }
  0xf8   :  { %114 = shalt.err (!%p111_p12)
}
  0xf9   :  { %s115_s26 = scalar_lea.hbm %s167_s1, 16 }
  0xfa   :  { %p116_p13 = scmp.ne.s32.totalorder %s167_s1, %s115_s26  ;;  %p119_p0 = scmp.lt.u32.totalorder %s115_s26, %s167_s1 }
  0xfc   :  { %p121_p1 = pnand %p119_p0, %p116_p13 }
  0xfe   :  { %124 = shalt.err (!%p121_p1)
}
  0xff   :  { %68 = dma.vmem_to_hbm [thread:$0]  %s66_s20, 16, %s167_s1, [#allocation5]  }
 0x100   :  { %127 = dma.done.wait [#allocation5], 16  }
 0x101   :  { %128 = vsyncadd [#allocation5], 4294967280 }
 0x102   :  { %72 = vsyncpa [#allocation4], 1 }
 0x103   :  { %73 = vsyncpa [#allocation5], 1 }

</bundles_post_ra>
